<compile_context>
chip_gen: v6e
topology: v6e:2x2x1
jax: 0.10.0
libtpu: 0.0.40
codegen_flags: <defaults>
</compile_context>

<pallas_src>
import functools

import numpy as np
import jax
import jax.numpy as jnp
from jax.experimental import pallas as pl
from jax.experimental.pallas import tpu as pltpu


# VMEM budget per grid step: (2 inputs + 2 outputs) x double-buffer x block bytes.
_DEFAULT_BLOCK_BUDGET = 8 * 1024 * 1024


def _build_copy_plan(idxs, half):
    """Static copy plan: idxs[o] = source channel (in the virtual concat) for output o.

    Returns two tuples (plan_a, plan_b), one per output half, of runs
    (out_offset, src_half, src_offset, run_length) with maximal coalescing of
    consecutive source channels.
    """
    idxs = [int(i) for i in idxs]
    C = 2 * half
    plans = ([], [])
    o = 0
    while o < C:
        out_half = 0 if o < half else 1
        out_end = half if out_half == 0 else C
        s = idxs[o]
        which = 0 if s < half else 1
        src = s - which * half
        length = 1
        while (o + length < out_end
               and src + length < half              # stay inside the source half
               and idxs[o + length] == s + length):  # consecutive source channels
            length += 1
        plans[out_half].append((o - out_half * half, which, src, length))
        o += length
    return tuple(plans[0]), tuple(plans[1])


def _choose_tiles(N, C, hw, itemsize, budget):
    """Pick (batch_tile, hw_tile) so the per-step VMEM footprint fits `budget`."""
    def step_bytes(tn, thw):
        return 8 * tn * C * thw * itemsize   # 2 in + 2 out, double buffered

    if hw % 128 == 0:
        hw_tiles = [m * 128 for m in range(hw // 128, 0, -1) if hw % (m * 128) == 0]
    else:
        hw_tiles = [hw]                       # last dim must be 128-multiple or full extent
    n_tiles = [d for d in range(N, 0, -1) if N % d == 0]

    for thw in hw_tiles:                      # prefer the largest lane-dense tile
        for tn in n_tiles:                    # then the largest batch tile that fits
            if step_bytes(tn, thw) <= budget:
                return tn, thw
    # TODO(synk): for pathological channel counts even a (1, C, 128) block exceeds the
    # budget; fall back to the minimal tile and rely on the default scoped-VMEM limit.
    return 1, hw_tiles[-1]


def _make_kernel(plan_a, plan_b):
    # Everything in the plans is a Python constant -> the body lowers to static
    # (run-coalesced) VMEM slice copies, unrolled once at trace time.
    def kernel(xa_ref, xb_ref, oa_ref, ob_ref):
        srcs = (xa_ref, xb_ref)
        for out_ref, plan in ((oa_ref, plan_a), (ob_ref, plan_b)):
            for o, which, s, ln in plan:
                out_ref[:, o:o + ln, :] = srcs[which][:, s:s + ln, :]
    return kernel


@functools.lru_cache(maxsize=None)
def _build_shuffle_fn(N, half, H, W, dtype_str, plan_a, plan_b,
                      block_budget=_DEFAULT_BLOCK_BUDGET):
    dtype = jnp.dtype(dtype_str)
    hw = H * W
    tn, thw = _choose_tiles(N, 2 * half, hw, dtype.itemsize, block_budget)
    grid = (N // tn, hw // thw)

    def make_spec():
        return pl.BlockSpec((tn, half, thw), lambda i, j: (i, 0, j))

    call = pl.pallas_call(
        _make_kernel(plan_a, plan_b),
        grid=grid,
        in_specs=[make_spec(), make_spec()],
        out_specs=(make_spec(), make_spec()),
        out_shape=(jax.ShapeDtypeStruct((N, half, hw), dtype),
                   jax.ShapeDtypeStruct((N, half, hw), dtype)),
        compiler_params=pltpu.CompilerParams(
            dimension_semantics=("parallel", "parallel")),
    )

    def fn(x_a, x_b):
        oa, ob = call(x_a.reshape(N, half, hw), x_b.reshape(N, half, hw))
        return oa.reshape(N, half, H, W), ob.reshape(N, half, H, W)

    return jax.jit(fn)


class Shuffle:
    """JAX/Pallas port of the PyTorch Shuffle module.

    forward(x, sldj_x, reverse=False):
      x is a tuple of two arrays, each (N, num_channels, H, W).  They are
      (logically) concatenated along channels, permuted with a fixed random
      permutation (or its inverse if reverse=True), split back into two halves,
      and returned along with the untouched sldj_x.
    """

    def __init__(self, num_channels, seed=42):
        c = num_channels * 2
        rng = np.random.default_rng(seed)             # deterministic stand-in for torch.randperm
        self.fwd_idxs = rng.permutation(c).astype(np.int32)
        self.rev_idxs = np.argsort(self.fwd_idxs).astype(np.int32)   # rev[fwd[i]] = i
        self.num_total = c
        half = num_channels
        self._plan_fwd = _build_copy_plan(self.fwd_idxs, half)
        self._plan_rev = _build_copy_plan(self.rev_idxs, half)

    def __call__(self, x, sldj_x, reverse=False):
        x_a, x_b = x
        assert x_a.shape[1] + x_b.shape[1] == self.num_total, "Mismatched number of channels"
        assert x_a.shape == x_b.shape, "Halves must have identical shapes"
        N, half, H, W = x_a.shape
        plan_a, plan_b = self._plan_rev if reverse else self._plan_fwd
        fn = _build_shuffle_fn(N, half, H, W, jnp.dtype(x_a.dtype).name, plan_a, plan_b)
        out_a, out_b = fn(x_a, x_b)
        return (out_a, out_b), sldj_x


if __name__ == "__main__":
    key = jax.random.PRNGKey(0)
    k1, k2, k3 = jax.random.split(key, 3)

    N, num_channels, H, W = 2, 4, 16, 16
    x_a = jax.random.normal(k1, (N, num_channels, H, W), dtype=jnp.float32)
    x_b = jax.random.normal(k2, (N, num_channels, H, W), dtype=jnp.float32)
    sldj = jax.random.normal(k3, (N,), dtype=jnp.float32)

    mod = Shuffle(num_channels)

    # Forward.
    (y_a, y_b), sldj_out = mod((x_a, x_b), sldj, reverse=False)
    y_a, y_b, sldj_out = jax.block_until_ready((y_a, y_b, sldj_out))

    # Reference check (forward).
    x_cat = jnp.concatenate([x_a, x_b], axis=1)
    ref = jnp.take(x_cat, jnp.asarray(mod.fwd_idxs), axis=1)
    assert jnp.array_equal(jnp.concatenate([y_a, y_b], axis=1), ref)
    assert jnp.array_equal(sldj_out, sldj)

    # Reverse must invert forward.
    (z_a, z_b), _ = mod((y_a, y_b), sldj, reverse=True)
    z_a, z_b = jax.block_until_ready((z_a, z_b))
    assert jnp.array_equal(z_a, x_a)
    assert jnp.array_equal(z_b, x_b)

    # Also exercise the tiled (multi-block grid) path by forcing a tiny VMEM budget.
    fn_tiled = _build_shuffle_fn(N, num_channels, H, W, "float32",
                                 mod._plan_fwd[0], mod._plan_fwd[1],
                                 block_budget=16 * 1024)
    t_a, t_b = jax.block_until_ready(fn_tiled(x_a, x_b))
    assert jnp.array_equal(jnp.concatenate([t_a, t_b], axis=1), ref)

    print("KERNEL_OK")
</pallas_src>

<mosaic_0001>
module attributes {stable_mosaic.version = 11 : i64} {
  func.func @kernel(%arg0: i32, %arg1: i32, %arg2: memref<2x4x256xf32, #tpu.memory_space<vmem>>, %arg3: memref<2x4x256xf32, #tpu.memory_space<vmem>>, %arg4: memref<2x4x256xf32, #tpu.memory_space<vmem>>, %arg5: memref<2x4x256xf32, #tpu.memory_space<vmem>>) attributes {dimension_semantics = [#tpu.dimension_semantics<parallel>, #tpu.dimension_semantics<parallel>], iteration_bounds = array<i64: 1, 1>, scalar_prefetch = 0 : i64, scratch_operands = 0 : i64, tpu.core_type = #tpu.core_type<tc>, window_params = [{transform_indices = @transform_0, window_bounds = array<i64: 2, 4, 256>}, {transform_indices = @transform_1, window_bounds = array<i64: 2, 4, 256>}, {transform_indices = @transform_2, window_bounds = array<i64: 2, 4, 256>}, {transform_indices = @transform_3, window_bounds = array<i64: 2, 4, 256>}]} {
    %c0 = arith.constant 0 : index
    %c3 = arith.constant 3 : index
    %c0_0 = arith.constant 0 : index
    %0 = vector.load %arg2[%c0, %c3, %c0_0] : memref<2x4x256xf32, #tpu.memory_space<vmem>>, vector<2x1x256xf32>
    %c0_1 = arith.constant 0 : index
    %c0_2 = arith.constant 0 : index
    %c0_3 = arith.constant 0 : index
    %1 = vector.load %arg4[%c0_1, %c0_2, %c0_3] : memref<2x4x256xf32, #tpu.memory_space<vmem>>, vector<2x1x256xf32>
    tpu.vector_store %arg4[%c0_1, %c0_2, %c0_3], %0 {strides = array<i32>} : memref<2x4x256xf32, #tpu.memory_space<vmem>>, vector<2x1x256xf32>,
    %c0_4 = arith.constant 0 : index
    %c0_5 = arith.constant 0 : index
    %c0_6 = arith.constant 0 : index
    %2 = vector.load %arg3[%c0_4, %c0_5, %c0_6] : memref<2x4x256xf32, #tpu.memory_space<vmem>>, vector<2x1x256xf32>
    %c0_7 = arith.constant 0 : index
    %c1 = arith.constant 1 : index
    %c0_8 = arith.constant 0 : index
    %3 = vector.load %arg4[%c0_7, %c1, %c0_8] : memref<2x4x256xf32, #tpu.memory_space<vmem>>, vector<2x1x256xf32>
    tpu.vector_store %arg4[%c0_7, %c1, %c0_8], %2 {strides = array<i32>} : memref<2x4x256xf32, #tpu.memory_space<vmem>>, vector<2x1x256xf32>,
    %c0_9 = arith.constant 0 : index
    %c2 = arith.constant 2 : index
    %c0_10 = arith.constant 0 : index
    %4 = vector.load %arg2[%c0_9, %c2, %c0_10] : memref<2x4x256xf32, #tpu.memory_space<vmem>>, vector<2x1x256xf32>
    %c0_11 = arith.constant 0 : index
    %c2_12 = arith.constant 2 : index
    %c0_13 = arith.constant 0 : index
    %5 = vector.load %arg4[%c0_11, %c2_12, %c0_13] : memref<2x4x256xf32, #tpu.memory_space<vmem>>, vector<2x1x256xf32>
    tpu.vector_store %arg4[%c0_11, %c2_12, %c0_13], %4 {strides = array<i32>} : memref<2x4x256xf32, #tpu.memory_space<vmem>>, vector<2x1x256xf32>,
    %c0_14 = arith.constant 0 : index
    %c3_15 = arith.constant 3 : index
    %c0_16 = arith.constant 0 : index
    %6 = vector.load %arg3[%c0_14, %c3_15, %c0_16] : memref<2x4x256xf32, #tpu.memory_space<vmem>>, vector<2x1x256xf32>
    %c0_17 = arith.constant 0 : index
    %c3_18 = arith.constant 3 : index
    %c0_19 = arith.constant 0 : index
    %7 = vector.load %arg4[%c0_17, %c3_18, %c0_19] : memref<2x4x256xf32, #tpu.memory_space<vmem>>, vector<2x1x256xf32>
    tpu.vector_store %arg4[%c0_17, %c3_18, %c0_19], %6 {strides = array<i32>} : memref<2x4x256xf32, #tpu.memory_space<vmem>>, vector<2x1x256xf32>,
    %c0_20 = arith.constant 0 : index
    %c2_21 = arith.constant 2 : index
    %c0_22 = arith.constant 0 : index
    %8 = vector.load %arg3[%c0_20, %c2_21, %c0_22] : memref<2x4x256xf32, #tpu.memory_space<vmem>>, vector<2x1x256xf32>
    %c0_23 = arith.constant 0 : index
    %c0_24 = arith.constant 0 : index
    %c0_25 = arith.constant 0 : index
    %9 = vector.load %arg5[%c0_23, %c0_24, %c0_25] : memref<2x4x256xf32, #tpu.memory_space<vmem>>, vector<2x1x256xf32>
    tpu.vector_store %arg5[%c0_23, %c0_24, %c0_25], %8 {strides = array<i32>} : memref<2x4x256xf32, #tpu.memory_space<vmem>>, vector<2x1x256xf32>,
    %c0_26 = arith.constant 0 : index
    %c1_27 = arith.constant 1 : index
    %c0_28 = arith.constant 0 : index
    %10 = vector.load %arg2[%c0_26, %c1_27, %c0_28] : memref<2x4x256xf32, #tpu.memory_space<vmem>>, vector<2x1x256xf32>
    %c0_29 = arith.constant 0 : index
    %c1_30 = arith.constant 1 : index
    %c0_31 = arith.constant 0 : index
    %11 = vector.load %arg5[%c0_29, %c1_30, %c0_31] : memref<2x4x256xf32, #tpu.memory_space<vmem>>, vector<2x1x256xf32>
    tpu.vector_store %arg5[%c0_29, %c1_30, %c0_31], %10 {strides = array<i32>} : memref<2x4x256xf32, #tpu.memory_space<vmem>>, vector<2x1x256xf32>,
    %c0_32 = arith.constant 0 : index
    %c1_33 = arith.constant 1 : index
    %c0_34 = arith.constant 0 : index
    %12 = vector.load %arg3[%c0_32, %c1_33, %c0_34] : memref<2x4x256xf32, #tpu.memory_space<vmem>>, vector<2x1x256xf32>
    %c0_35 = arith.constant 0 : index
    %c2_36 = arith.constant 2 : index
    %c0_37 = arith.constant 0 : index
    %13 = vector.load %arg5[%c0_35, %c2_36, %c0_37] : memref<2x4x256xf32, #tpu.memory_space<vmem>>, vector<2x1x256xf32>
    tpu.vector_store %arg5[%c0_35, %c2_36, %c0_37], %12 {strides = array<i32>} : memref<2x4x256xf32, #tpu.memory_space<vmem>>, vector<2x1x256xf32>,
    %c0_38 = arith.constant 0 : index
    %c0_39 = arith.constant 0 : index
    %c0_40 = arith.constant 0 : index
    %14 = vector.load %arg2[%c0_38, %c0_39, %c0_40] : memref<2x4x256xf32, #tpu.memory_space<vmem>>, vector<2x1x256xf32>
    %c0_41 = arith.constant 0 : index
    %c3_42 = arith.constant 3 : index
    %c0_43 = arith.constant 0 : index
    %15 = vector.load %arg5[%c0_41, %c3_42, %c0_43] : memref<2x4x256xf32, #tpu.memory_space<vmem>>, vector<2x1x256xf32>
    tpu.vector_store %arg5[%c0_41, %c3_42, %c0_43], %14 {strides = array<i32>} : memref<2x4x256xf32, #tpu.memory_space<vmem>>, vector<2x1x256xf32>,
    return
  }
  func.func @transform_0(%arg0: i32, %arg1: i32) -> (i32, i32, i32) {
    %c0_i32 = arith.constant 0 : i32
    %c0_i32_0 = arith.constant 0 : i32
    return %arg0, %c0_i32, %arg1 : i32, i32, i32
  }
  func.func @transform_1(%arg0: i32, %arg1: i32) -> (i32, i32, i32) {
    %c0_i32 = arith.constant 0 : i32
    %c0_i32_0 = arith.constant 0 : i32
    return %arg0, %c0_i32, %arg1 : i32, i32, i32
  }
  func.func @transform_2(%arg0: i32, %arg1: i32) -> (i32, i32, i32) {
    %c0_i32 = arith.constant 0 : i32
    %c0_i32_0 = arith.constant 0 : i32
    return %arg0, %c0_i32, %arg1 : i32, i32, i32
  }
  func.func @transform_3(%arg0: i32, %arg1: i32) -> (i32, i32, i32) {
    %c0_i32 = arith.constant 0 : i32
    %c0_i32_0 = arith.constant 0 : i32
    return %arg0, %c0_i32, %arg1 : i32, i32, i32
  }
}

</mosaic_0001>

<bundles_post_ra>
// kernel: fn.1
= control target key start
LH: loop header
LB: loop body
LE: loop exit
PB: predicated region body
PF: predicated region fallthrough
CT: control target
= control target key end

     0   :  { %v17_v0 = vlaneseq  ;;  %s265_s0 = inlined_call_operand.vmem [shape: f32[2,4,256], index: 0, kind: input, shape index: {}]   ;;  %s266_s2 = inlined_call_operand.vmem [shape: f32[2,4,256], index: 2, kind: output, shape index: {0}]   ;;  %s267_s1 = inlined_call_operand.vmem [shape: f32[2,4,256], index: 1, kind: input, shape index: {}]   ;;  %s268_s3 = inlined_call_operand.vmem [shape: f32[2,4,256], index: 3, kind: output, shape index: {1}]  }
   0x1   :  { %v85_v1 = vld [vmem:[%s265_s0 + $0x3] ss:$4 sm:$0x3]  ;;  %v86_v2 = vld [vmem:[%s265_s0 + $0xb] ss:$4 sm:$0x3] }
   0x2   :  { %vm139_vm0 = vcmp.lt.s32.totalorder %v17_v0, 256  ;;  %v24_v4 = vld [vmem:[%s267_s1] ss:$4 sm:$0x3] }
   0x3   :  { %21 = vst.msk [vmem:[%s266_s2] ss:$4 sm:$0x3] %vm139_vm0, %v85_v1  ;;  %87 = vst.msk [vmem:[%s266_s2 + $0x8] ss:$4 sm:$0x3] %vm139_vm0, %v86_v2 }
   0x4   :  { %89 = vst.msk [vmem:[%s266_s2 + $0x1] ss:$4 sm:$0x3] %vm139_vm0, %v24_v4  ;;  %v88_v5 = vld [vmem:[%s267_s1 + $0x8] ss:$4 sm:$0x3] }
   0x5   :  { %v91_v6 = vld [vmem:[%s265_s0 + $0x2] ss:$4 sm:$0x3]  ;;  %90 = vst.msk [vmem:[%s266_s2 + $0x9] ss:$4 sm:$0x3] %vm139_vm0, %v88_v5 }
   0x6   :  { %93 = vst.msk [vmem:[%s266_s2 + $0x2] ss:$4 sm:$0x3] %vm139_vm0, %v91_v6  ;;  %v92_v7 = vld [vmem:[%s265_s0 + $0xa] ss:$4 sm:$0x3] }
   0x7   :  { %v95_v8 = vld [vmem:[%s267_s1 + $0x3] ss:$4 sm:$0x3]  ;;  %94 = vst.msk [vmem:[%s266_s2 + $0xa] ss:$4 sm:$0x3] %vm139_vm0, %v92_v7 }
   0x8   :  { %97 = vst.msk [vmem:[%s266_s2 + $0x3] ss:$4 sm:$0x3] %vm139_vm0, %v95_v8  ;;  %v96_v9 = vld [vmem:[%s267_s1 + $0xb] ss:$4 sm:$0x3] }
   0x9   :  { %v99_v10 = vld [vmem:[%s267_s1 + $0x2] ss:$4 sm:$0x3]  ;;  %98 = vst.msk [vmem:[%s266_s2 + $0xb] ss:$4 sm:$0x3] %vm139_vm0, %v96_v9 }
   0xa   :  { %51 = vst.msk [vmem:[%s268_s3] ss:$4 sm:$0x3] %vm139_vm0, %v99_v10  ;;  %v100_v11 = vld [vmem:[%s267_s1 + $0xa] ss:$4 sm:$0x3] }
   0xb   :  { %v102_v12 = vld [vmem:[%s265_s0 + $0x1] ss:$4 sm:$0x3]  ;;  %101 = vst.msk [vmem:[%s268_s3 + $0x8] ss:$4 sm:$0x3] %vm139_vm0, %v100_v11 }
   0xc   :  { %104 = vst.msk [vmem:[%s268_s3 + $0x1] ss:$4 sm:$0x3] %vm139_vm0, %v102_v12  ;;  %v103_v13 = vld [vmem:[%s265_s0 + $0x9] ss:$4 sm:$0x3] }
   0xd   :  { %v106_v14 = vld [vmem:[%s267_s1 + $0x1] ss:$4 sm:$0x3]  ;;  %105 = vst.msk [vmem:[%s268_s3 + $0x9] ss:$4 sm:$0x3] %vm139_vm0, %v103_v13 }
   0xe   :  { %108 = vst.msk [vmem:[%s268_s3 + $0x2] ss:$4 sm:$0x3] %vm139_vm0, %v106_v14  ;;  %v107_v15 = vld [vmem:[%s267_s1 + $0x9] ss:$4 sm:$0x3] }
   0xf   :  { %v70_v16 = vld [vmem:[%s265_s0] ss:$4 sm:$0x3]  ;;  %109 = vst.msk [vmem:[%s268_s3 + $0xa] ss:$4 sm:$0x3] %vm139_vm0, %v107_v15 }
  0x10   :  { %111 = vst.msk [vmem:[%s268_s3 + $0x3] ss:$4 sm:$0x3] %vm139_vm0, %v70_v16  ;;  %v110_v17 = vld [vmem:[%s265_s0 + $0x8] ss:$4 sm:$0x3] }
  0x11   :  { %112 = vst.msk [vmem:[%s268_s3 + $0xb] ss:$4 sm:$0x3] %vm139_vm0, %v110_v17 }

</bundles_post_ra>
